<compile_context>
chip_gen: v6e
topology: v6e:2x2x1
jax: 0.10.0
libtpu: 0.0.40
codegen_flags: <defaults>
</compile_context>

<pallas_src>
import jax
import jax.numpy as jnp
from jax.experimental import pallas as pl
from jax.experimental.pallas import tpu as pltpu

_LANES = 128
_VMEM_BUDGET = 40 * 1024 * 1024   # per-step footprint budget (fits v7x 64 MiB)
_VMEM_LIMIT = 48 * 1024 * 1024    # scoped-VMEM cap (<= ~48 MiB keeps v7x safe)


def _round_up(x, m):
    return ((x + m - 1) // m) * m


def _head_kernel(x_ref, w1_ref, b1_ref, w2_ref, b2_ref, w3_ref, b3_ref,
                 o_ref, h1_acc):
    """Fused 3-layer MLP head on one (tile_b, tile_k) block.

    Grid = (batch tiles, K tiles over outsize).  Layer-1 partial products are
    accumulated in fp32 VMEM scratch; layers 2/3 and the output store run only
    on the last K step.  Dropout is inference-mode identity.
    """
    k = pl.program_id(1)

    @pl.when(k == 0)
    def _():
        h1_acc[...] = jnp.zeros_like(h1_acc)

    # Cast activations to bf16 in-kernel (no extra HBM pass in the wrapper);
    # the MXU accumulates in fp32.
    xb = x_ref[...].astype(jnp.bfloat16)
    h1_acc[...] += jnp.dot(xb, w1_ref[...], preferred_element_type=jnp.float32)

    @pl.when(k == pl.num_programs(1) - 1)
    def _():
        # dropout1 / dropout2 == identity (inference).
        # TODO(synk): training-mode dropout via pltpu.prng_seed/prng_random_bits.
        h1 = jnp.maximum(h1_acc[...] + b1_ref[...], 0.0).astype(jnp.bfloat16)
        h2 = jnp.dot(h1, w2_ref[...], preferred_element_type=jnp.float32)
        h2 = jnp.maximum(h2 + b2_ref[...], 0.0).astype(jnp.bfloat16)
        out = jnp.dot(h2, w3_ref[...], preferred_element_type=jnp.float32) + b3_ref[...]
        o_ref[...] = out.astype(o_ref.dtype)


def _pick_tile_k(outsize, max_tk):
    """Largest lane-aligned divisor of outsize <= max_tk (or outsize itself)."""
    if outsize <= max_tk:
        return outsize
    tk = (max_tk // _LANES) * _LANES
    while tk >= _LANES:
        if outsize % tk == 0:
            return tk
        tk -= _LANES
    # TODO(synk): ragged-K masking for outsize with no lane-aligned divisor.
    return outsize


def _vmem_footprint(tb, tk, nk, x_bytes, d_hidden, n_pad, out_bytes, single_buf):
    w_copies = 1 if single_buf else 2
    w1_copies = w_copies if nk == 1 else 2
    return (
        2 * tb * tk * x_bytes                       # x tile (double-buffered)
        + w1_copies * tk * d_hidden * 2             # w1 (bf16)
        + w_copies * d_hidden * d_hidden * 2        # w2 (bf16)
        + w_copies * d_hidden * n_pad * 2           # w3 (bf16, lane-padded)
        + w_copies * (2 * d_hidden + n_pad) * 4     # biases (fp32)
        + 2 * tb * n_pad * out_bytes                # out tile (double-buffered)
        + tb * d_hidden * 4                         # h1 fp32 scratch
    )


def classifier_head(x, params, *, tile_b=512, max_tile_k=2048,
                    out_dtype=jnp.float32):
    """x: (B, ...) flattened to (B, outsize). Returns (B, t_bins) in out_dtype."""
    B = x.shape[0]
    x2d = x.reshape(B, -1)               # metadata-only reshape; dtype untouched
    outsize = x2d.shape[1]
    w1, b1, w2, b2, w3, b3 = params
    d_hidden = w1.shape[1]
    t_bins = w3.shape[1]
    n_pad = max(_LANES, _round_up(t_bins, _LANES))
    x_bytes = x2d.dtype.itemsize
    out_bytes = jnp.dtype(out_dtype).itemsize

    # --- weight prep: bf16 MXU operands, fp32 biases, lane-dense padded fc ----
    # (weights are tiny relative to x; in production store them pre-cast/padded)
    w1b = w1.astype(jnp.bfloat16)
    w2b = w2.astype(jnp.bfloat16)
    b1f = b1.reshape(1, d_hidden).astype(jnp.float32)
    b2f = b2.reshape(1, d_hidden).astype(jnp.float32)
    w3p = jnp.zeros((d_hidden, n_pad), jnp.bfloat16).at[:, :t_bins].set(
        w3.astype(jnp.bfloat16))
    b3p = jnp.zeros((1, n_pad), jnp.float32).at[:, :t_bins].set(
        b3.reshape(1, t_bins).astype(jnp.float32))

    # --- K tiling of layer 1 (only kicks in for large outsize) ---------------
    tk = _pick_tile_k(outsize, max_tile_k)
    nk = outsize // tk

    # --- adaptive batch tile --------------------------------------------------
    if B <= tile_b:
        tb = B                                    # one full-batch block, no padding
    else:
        tb = _round_up(min(tile_b, B), 8)
    # Shrink tb until the per-step VMEM footprint fits the (v7x-safe) budget.
    while (_vmem_footprint(tb, tk, nk, x_bytes, d_hidden, n_pad, out_bytes, True)
           > _VMEM_BUDGET and tb > 8):
        nxt = max(8, _round_up(tb // 2, 8))
        if nxt >= tb:
            break
        tb = nxt
    nb = pl.cdiv(B, tb)

    footprint = _vmem_footprint(tb, tk, nk, x_bytes, d_hidden, n_pad, out_bytes, True)
    vmem_limit = int(min(max(_VMEM_LIMIT, footprint + 8 * 1024 * 1024),
                         100 * 1024 * 1024))

    # --- cost hint for the XLA scheduler --------------------------------------
    flops = int(2 * B * d_hidden * (outsize + d_hidden + n_pad))
    bytes_accessed = int(
        B * outsize * x_bytes
        + (outsize + d_hidden) * d_hidden * 2
        + d_hidden * n_pad * 2
        + (2 * d_hidden + n_pad) * 4
        + B * n_pad * out_bytes
    )

    def build_and_run(single_buffer_weights):
        def resident(shape):
            # Constant index map -> fetched once, stays VMEM-resident; single
            # buffering avoids burning VMEM on a useless second copy.
            if single_buffer_weights:
                return pl.BlockSpec(shape, lambda i, k: (0, 0),
                                    pipeline_mode=pl.Buffered(1))
            return pl.BlockSpec(shape, lambda i, k: (0, 0))

        if single_buffer_weights and nk == 1:
            w1_spec = pl.BlockSpec((tk, d_hidden), lambda i, k: (k, 0),
                                   pipeline_mode=pl.Buffered(1))
        else:
            w1_spec = pl.BlockSpec((tk, d_hidden), lambda i, k: (k, 0))

        in_specs = [
            # activations: (batch tile, K tile), software-pipelined
            pl.BlockSpec((tb, tk), lambda i, k: (i, k)),
            w1_spec,
            resident((1, d_hidden)),
            resident((d_hidden, d_hidden)),
            resident((1, d_hidden)),
            resident((d_hidden, n_pad)),
            resident((1, n_pad)),
        ]
        out_specs = pl.BlockSpec((tb, n_pad), lambda i, k: (i, 0))

        return pl.pallas_call(
            _head_kernel,
            out_shape=jax.ShapeDtypeStruct((B, n_pad), out_dtype),
            grid_spec=pltpu.PrefetchScalarGridSpec(
                num_scalar_prefetch=0,
                grid=(nb, nk),
                in_specs=in_specs,
                out_specs=out_specs,
                scratch_shapes=[pltpu.VMEM((tb, d_hidden), jnp.float32)],
            ),
            compiler_params=pltpu.CompilerParams(
                # batch axis independent -> megacore sharding on v7x; reduction
                # (K) axis last and arbitrary.
                dimension_semantics=("parallel", "arbitrary"),
                vmem_limit_bytes=vmem_limit,
            ),
            cost_estimate=pl.CostEstimate(
                flops=flops, transcendentals=0, bytes_accessed=bytes_accessed),
        )(x2d, w1b, b1f, w2b, b2f, w3p, b3p)

    try:
        out = build_and_run(True)
    except Exception:
        # Fallback for JAX builds that reject pipeline_mode=pl.Buffered(1).
        out = build_and_run(False)

    return out[:, :t_bins]


def init_params(key, outsize, d_hidden=256, t_bins=4):
    """Parameter init mirroring the PyTorch module (shapes stored as (in, out)).
    linear1/linear2 weights: kaiming-normal (std = sqrt(2/fan_in)); fc weight
    and all biases: PyTorch default uniform(-1/sqrt(fan_in), 1/sqrt(fan_in))."""
    k1, k2, k3, k4, k5, k6 = jax.random.split(key, 6)

    w1 = jax.random.normal(k1, (outsize, d_hidden), jnp.float32) * jnp.sqrt(2.0 / outsize)
    b1 = jax.random.uniform(k2, (1, d_hidden), jnp.float32,
                            -1.0 / jnp.sqrt(outsize), 1.0 / jnp.sqrt(outsize))

    w2 = jax.random.normal(k3, (d_hidden, d_hidden), jnp.float32) * jnp.sqrt(2.0 / d_hidden)
    b2 = jax.random.uniform(k4, (1, d_hidden), jnp.float32,
                            -1.0 / jnp.sqrt(d_hidden), 1.0 / jnp.sqrt(d_hidden))

    w3 = jax.random.uniform(k5, (d_hidden, t_bins), jnp.float32,
                            -1.0 / jnp.sqrt(d_hidden), 1.0 / jnp.sqrt(d_hidden))
    b3 = jax.random.uniform(k6, (1, t_bins), jnp.float32,
                            -1.0 / jnp.sqrt(d_hidden), 1.0 / jnp.sqrt(d_hidden))
    return (w1, b1, w2, b2, w3, b3)


def _reference(x, params):
    """Pure-JAX reference matching the kernel's bf16/fp32 mixed precision
    (dropout = identity)."""
    w1, b1, w2, b2, w3, b3 = params
    x2d = x.reshape(x.shape[0], -1).astype(jnp.bfloat16)
    h1 = jnp.dot(x2d, w1.astype(jnp.bfloat16), preferred_element_type=jnp.float32)
    h1 = jnp.maximum(h1 + b1.astype(jnp.float32), 0.0).astype(jnp.bfloat16)
    h2 = jnp.dot(h1, w2.astype(jnp.bfloat16), preferred_element_type=jnp.float32)
    h2 = jnp.maximum(h2 + b2.astype(jnp.float32), 0.0).astype(jnp.bfloat16)
    return (jnp.dot(h2, w3.astype(jnp.bfloat16), preferred_element_type=jnp.float32)
            + b3.astype(jnp.float32))


if __name__ == "__main__":
    key = jax.random.PRNGKey(0)
    kx, kp = jax.random.split(key)

    # Small shapes: batch=8, features (4, 8, 8) -> outsize = 256
    B, C, H, W = 8, 4, 8, 8
    outsize = C * H * W
    d_hidden, t_bins = 128, 4

    x = jax.random.normal(kx, (B, C, H, W), jnp.float32)
    params = init_params(kp, outsize, d_hidden=d_hidden, t_bins=t_bins)

    out = classifier_head(x, params)
    out = jax.block_until_ready(out)

    ref = _reference(x, params)
    assert out.shape == (B, t_bins), out.shape
    assert jnp.allclose(out, ref, atol=2e-2, rtol=2e-2), "mismatch vs reference"

    print("KERNEL_OK")
</pallas_src>

<mosaic_0001>
module attributes {stable_mosaic.version = 11 : i64} {
  func.func @_head_kernel(%arg0: i32, %arg1: i32, %arg2: memref<8x256xf32, #tpu.memory_space<vmem>>, %arg3: memref<256x128xbf16, #tpu.memory_space<vmem>>, %arg4: memref<1x128xf32, #tpu.memory_space<vmem>>, %arg5: memref<128x128xbf16, #tpu.memory_space<vmem>>, %arg6: memref<1x128xf32, #tpu.memory_space<vmem>>, %arg7: memref<128x128xbf16, #tpu.memory_space<vmem>>, %arg8: memref<1x128xf32, #tpu.memory_space<vmem>>, %arg9: memref<8x128xf32, #tpu.memory_space<vmem>>, %arg10: memref<8x128xf32, #tpu.memory_space<vmem>>) attributes {dimension_semantics = [#tpu.dimension_semantics<parallel>, #tpu.dimension_semantics<arbitrary>], iteration_bounds = array<i64: 1, 1>, scalar_prefetch = 0 : i64, scratch_operands = 1 : i64, tpu.core_type = #tpu.core_type<tc>, window_params = [{transform_indices = @transform_0, window_bounds = array<i64: 8, 256>}, {pipeline_mode = #tpu.pipeline_mode<synchronous>, transform_indices = @transform_1, window_bounds = array<i64: 256, 128>}, {pipeline_mode = #tpu.pipeline_mode<synchronous>, transform_indices = @transform_2, window_bounds = array<i64: 1, 128>}, {pipeline_mode = #tpu.pipeline_mode<synchronous>, transform_indices = @transform_3, window_bounds = array<i64: 128, 128>}, {pipeline_mode = #tpu.pipeline_mode<synchronous>, transform_indices = @transform_4, window_bounds = array<i64: 1, 128>}, {pipeline_mode = #tpu.pipeline_mode<synchronous>, transform_indices = @transform_5, window_bounds = array<i64: 128, 128>}, {pipeline_mode = #tpu.pipeline_mode<synchronous>, transform_indices = @transform_6, window_bounds = array<i64: 1, 128>}, {transform_indices = @transform_7, window_bounds = array<i64: 8, 128>}]} {
    %c0_i32 = arith.constant 0 : i32
    %0 = arith.cmpi eq, %arg1, %c0_i32 : i32
    %1 = arith.extui %0 : i1 to i32
    %c0_i32_0 = arith.constant 0 : i32
    %2 = arith.cmpi ne, %1, %c0_i32_0 : i32
    scf.if %2 {
      %cst_10 = arith.constant 0.000000e+00 : f32
      %13 = vector.broadcast %cst_10 : f32 to vector<8x128xf32>
      %c0_11 = arith.constant 0 : index
      %c0_12 = arith.constant 0 : index
      %14 = vector.load %arg10[%c0_11, %c0_12] : memref<8x128xf32, #tpu.memory_space<vmem>>, vector<8x128xf32>
      tpu.vector_store %arg10[%c0_11, %c0_12], %13 {strides = array<i32>} : memref<8x128xf32, #tpu.memory_space<vmem>>, vector<8x128xf32>,
    } else {
    }
    %c0 = arith.constant 0 : index
    %c0_1 = arith.constant 0 : index
    %3 = vector.load %arg2[%c0, %c0_1] : memref<8x256xf32, #tpu.memory_space<vmem>>, vector<8x256xf32>
    %4 = arith.truncf %3 : vector<8x256xf32> to vector<8x256xbf16>
    %c0_2 = arith.constant 0 : index
    %c0_3 = arith.constant 0 : index
    %5 = vector.load %arg10[%c0_2, %c0_3] : memref<8x128xf32, #tpu.memory_space<vmem>>, vector<8x128xf32>
    %c0_4 = arith.constant 0 : index
    %c0_5 = arith.constant 0 : index
    %6 = vector.load %arg3[%c0_4, %c0_5] : memref<256x128xbf16, #tpu.memory_space<vmem>>, vector<256x128xbf16>
    %cst = arith.constant dense<0.000000e+00> : vector<8x128xf32>
    %7 = tpu.matmul %4, %6, %cst {dimension_numbers = #tpu.dot_dimension_numbers<[1], [0], [0], [1], [0, 0, 1, 1], [], []>} : vector<8x256xbf16>, vector<256x128xbf16>, vector<8x128xf32> -> vector<8x128xf32>
    %8 = arith.addf %5, %7 : vector<8x128xf32>
    %c0_6 = arith.constant 0 : index
    %c0_7 = arith.constant 0 : index
    %9 = vector.load %arg10[%c0_6, %c0_7] : memref<8x128xf32, #tpu.memory_space<vmem>>, vector<8x128xf32>
    tpu.vector_store %arg10[%c0_6, %c0_7], %8 {strides = array<i32>} : memref<8x128xf32, #tpu.memory_space<vmem>>, vector<8x128xf32>,
    %c0_i32_8 = arith.constant 0 : i32
    %10 = arith.cmpi eq, %arg1, %c0_i32_8 : i32
    %11 = arith.extui %10 : i1 to i32
    %c0_i32_9 = arith.constant 0 : i32
    %12 = arith.cmpi ne, %11, %c0_i32_9 : i32
    scf.if %12 {
      %c0_10 = arith.constant 0 : index
      %c0_11 = arith.constant 0 : index
      %13 = vector.load %arg10[%c0_10, %c0_11] : memref<8x128xf32, #tpu.memory_space<vmem>>, vector<8x128xf32>
      %c0_12 = arith.constant 0 : index
      %c0_13 = arith.constant 0 : index
      %14 = vector.load %arg4[%c0_12, %c0_13] : memref<1x128xf32, #tpu.memory_space<vmem>>, vector<1x128xf32>
      %15 = vector.broadcast %14 : vector<1x128xf32> to vector<8x128xf32>
      %16 = arith.addf %13, %15 : vector<8x128xf32>
      %cst_14 = arith.constant 0.000000e+00 : f32
      %17 = vector.broadcast %cst_14 : f32 to vector<8x128xf32>
      %18 = arith.maximumf %16, %17 : vector<8x128xf32>
      %19 = arith.truncf %18 : vector<8x128xf32> to vector<8x128xbf16>
      %c0_15 = arith.constant 0 : index
      %c0_16 = arith.constant 0 : index
      %20 = vector.load %arg5[%c0_15, %c0_16] : memref<128x128xbf16, #tpu.memory_space<vmem>>, vector<128x128xbf16>
      %cst_17 = arith.constant dense<0.000000e+00> : vector<8x128xf32>
      %21 = tpu.matmul %19, %20, %cst_17 {dimension_numbers = #tpu.dot_dimension_numbers<[1], [0], [0], [1], [0, 0, 1, 1], [], []>} : vector<8x128xbf16>, vector<128x128xbf16>, vector<8x128xf32> -> vector<8x128xf32>
      %c0_18 = arith.constant 0 : index
      %c0_19 = arith.constant 0 : index
      %22 = vector.load %arg6[%c0_18, %c0_19] : memref<1x128xf32, #tpu.memory_space<vmem>>, vector<1x128xf32>
      %23 = vector.broadcast %22 : vector<1x128xf32> to vector<8x128xf32>
      %24 = arith.addf %21, %23 : vector<8x128xf32>
      %cst_20 = arith.constant 0.000000e+00 : f32
      %25 = vector.broadcast %cst_20 : f32 to vector<8x128xf32>
      %26 = arith.maximumf %24, %25 : vector<8x128xf32>
      %27 = arith.truncf %26 : vector<8x128xf32> to vector<8x128xbf16>
      %c0_21 = arith.constant 0 : index
      %c0_22 = arith.constant 0 : index
      %28 = vector.load %arg7[%c0_21, %c0_22] : memref<128x128xbf16, #tpu.memory_space<vmem>>, vector<128x128xbf16>
      %cst_23 = arith.constant dense<0.000000e+00> : vector<8x128xf32>
      %29 = tpu.matmul %27, %28, %cst_23 {dimension_numbers = #tpu.dot_dimension_numbers<[1], [0], [0], [1], [0, 0, 1, 1], [], []>} : vector<8x128xbf16>, vector<128x128xbf16>, vector<8x128xf32> -> vector<8x128xf32>
      %c0_24 = arith.constant 0 : index
      %c0_25 = arith.constant 0 : index
      %30 = vector.load %arg8[%c0_24, %c0_25] : memref<1x128xf32, #tpu.memory_space<vmem>>, vector<1x128xf32>
      %31 = vector.broadcast %30 : vector<1x128xf32> to vector<8x128xf32>
      %32 = arith.addf %29, %31 : vector<8x128xf32>
      %c0_26 = arith.constant 0 : index
      %c0_27 = arith.constant 0 : index
      %33 = vector.load %arg9[%c0_26, %c0_27] : memref<8x128xf32, #tpu.memory_space<vmem>>, vector<8x128xf32>
      tpu.vector_store %arg9[%c0_26, %c0_27], %32 {strides = array<i32>} : memref<8x128xf32, #tpu.memory_space<vmem>>, vector<8x128xf32>,
    } else {
    }
    return
  }
  func.func @transform_0(%arg0: i32, %arg1: i32) -> (i32, i32) {
    %c0_i32 = arith.constant 0 : i32
    return %arg0, %arg1 : i32, i32
  }
  func.func @transform_1(%arg0: i32, %arg1: i32) -> (i32, i32) {
    %c0_i32 = arith.constant 0 : i32
    %c0_i32_0 = arith.constant 0 : i32
    return %arg1, %c0_i32 : i32, i32
  }
  func.func @transform_2(%arg0: i32, %arg1: i32) -> (i32, i32) {
    %c0_i32 = arith.constant 0 : i32
    %c0_i32_0 = arith.constant 0 : i32
    %c0_i32_1 = arith.constant 0 : i32
    return %c0_i32, %c0_i32_0 : i32, i32
  }
  func.func @transform_3(%arg0: i32, %arg1: i32) -> (i32, i32) {
    %c0_i32 = arith.constant 0 : i32
    %c0_i32_0 = arith.constant 0 : i32
    %c0_i32_1 = arith.constant 0 : i32
    return %c0_i32, %c0_i32_0 : i32, i32
  }
  func.func @transform_4(%arg0: i32, %arg1: i32) -> (i32, i32) {
    %c0_i32 = arith.constant 0 : i32
    %c0_i32_0 = arith.constant 0 : i32
    %c0_i32_1 = arith.constant 0 : i32
    return %c0_i32, %c0_i32_0 : i32, i32
  }
  func.func @transform_5(%arg0: i32, %arg1: i32) -> (i32, i32) {
    %c0_i32 = arith.constant 0 : i32
    %c0_i32_0 = arith.constant 0 : i32
    %c0_i32_1 = arith.constant 0 : i32
    return %c0_i32, %c0_i32_0 : i32, i32
  }
  func.func @transform_6(%arg0: i32, %arg1: i32) -> (i32, i32) {
    %c0_i32 = arith.constant 0 : i32
    %c0_i32_0 = arith.constant 0 : i32
    %c0_i32_1 = arith.constant 0 : i32
    return %c0_i32, %c0_i32_0 : i32, i32
  }
  func.func @transform_7(%arg0: i32, %arg1: i32) -> (i32, i32) {
    %c0_i32 = arith.constant 0 : i32
    %c0_i32_0 = arith.constant 0 : i32
    return %arg0, %c0_i32 : i32, i32
  }
}

module attributes {stable_mosaic.version = 11 : i64} {
  func.func @_head_kernel(%arg0: i32, %arg1: i32, %arg2: memref<8x256xf32, #tpu.memory_space<vmem>>, %arg3: memref<256x128xbf16, #tpu.memory_space<vmem>>, %arg4: memref<1x128xf32, #tpu.memory_space<vmem>>, %arg5: memref<128x128xbf16, #tpu.memory_space<vmem>>, %arg6: memref<1x128xf32, #tpu.memory_space<vmem>>, %arg7: memref<128x128xbf16, #tpu.memory_space<vmem>>, %arg8: memref<1x128xf32, #tpu.memory_space<vmem>>, %arg9: memref<8x128xf32, #tpu.memory_space<vmem>>, %arg10: memref<8x128xf32, #tpu.memory_space<vmem>>) attributes {dimension_semantics = [#tpu.dimension_semantics<parallel>, #tpu.dimension_semantics<arbitrary>], iteration_bounds = array<i64: 1, 1>, scalar_prefetch = 0 : i64, scratch_operands = 1 : i64, tpu.core_type = #tpu.core_type<tc>, window_params = [{transform_indices = @transform_0, window_bounds = array<i64: 8, 256>}, {transform_indices = @transform_1, window_bounds = array<i64: 256, 128>}, {pipeline_mode = #tpu.pipeline_mode<synchronous>, transform_indices = @transform_2, window_bounds = array<i64: 1, 128>}, {pipeline_mode = #tpu.pipeline_mode<synchronous>, transform_indices = @transform_3, window_bounds = array<i64: 128, 128>}, {pipeline_mode = #tpu.pipeline_mode<synchronous>, transform_indices = @transform_4, window_bounds = array<i64: 1, 128>}, {pipeline_mode = #tpu.pipeline_mode<synchronous>, transform_indices = @transform_5, window_bounds = array<i64: 128, 128>}, {pipeline_mode = #tpu.pipeline_mode<synchronous>, transform_indices = @transform_6, window_bounds = array<i64: 1, 128>}, {transform_indices = @transform_7, window_bounds = array<i64: 8, 128>}]} {
    %c0_i32 = arith.constant 0 : i32
    %0 = arith.cmpi eq, %arg1, %c0_i32 : i32
    %1 = arith.extui %0 : i1 to i32
    %c0_i32_0 = arith.constant 0 : i32
    %2 = arith.cmpi ne, %1, %c0_i32_0 : i32
    scf.if %2 {
      %cst_10 = arith.constant 0.000000e+00 : f32
      %13 = vector.broadcast %cst_10 : f32 to vector<8x128xf32>
      %c0_11 = arith.constant 0 : index
      %c0_12 = arith.constant 0 : index
      %14 = vector.load %arg10[%c0_11, %c0_12] : memref<8x128xf32, #tpu.memory_space<vmem>>, vector<8x128xf32>
      tpu.vector_store %arg10[%c0_11, %c0_12], %13 {strides = array<i32>} : memref<8x128xf32, #tpu.memory_space<vmem>>, vector<8x128xf32>,
    } else {
    }
    %c0 = arith.constant 0 : index
    %c0_1 = arith.constant 0 : index
    %3 = vector.load %arg2[%c0, %c0_1] : memref<8x256xf32, #tpu.memory_space<vmem>>, vector<8x256xf32>
    %4 = arith.truncf %3 : vector<8x256xf32> to vector<8x256xbf16>
    %c0_2 = arith.constant 0 : index
    %c0_3 = arith.constant 0 : index
    %5 = vector.load %arg10[%c0_2, %c0_3] : memref<8x128xf32, #tpu.memory_space<vmem>>, vector<8x128xf32>
    %c0_4 = arith.constant 0 : index
    %c0_5 = arith.constant 0 : index
    %6 = vector.load %arg3[%c0_4, %c0_5] : memref<256x128xbf16, #tpu.memory_space<vmem>>, vector<256x128xbf16>
    %cst = arith.constant dense<0.000000e+00> : vector<8x128xf32>
    %7 = tpu.matmul %4, %6, %cst {dimension_numbers = #tpu.dot_dimension_numbers<[1], [0], [0], [1], [0, 0, 1, 1], [], []>} : vector<8x256xbf16>, vector<256x128xbf16>, vector<8x128xf32> -> vector<8x128xf32>
    %8 = arith.addf %5, %7 : vector<8x128xf32>
    %c0_6 = arith.constant 0 : index
    %c0_7 = arith.constant 0 : index
    %9 = vector.load %arg10[%c0_6, %c0_7] : memref<8x128xf32, #tpu.memory_space<vmem>>, vector<8x128xf32>
    tpu.vector_store %arg10[%c0_6, %c0_7], %8 {strides = array<i32>} : memref<8x128xf32, #tpu.memory_space<vmem>>, vector<8x128xf32>,
    %c0_i32_8 = arith.constant 0 : i32
    %10 = arith.cmpi eq, %arg1, %c0_i32_8 : i32
    %11 = arith.extui %10 : i1 to i32
    %c0_i32_9 = arith.constant 0 : i32
    %12 = arith.cmpi ne, %11, %c0_i32_9 : i32
    scf.if %12 {
      %c0_10 = arith.constant 0 : index
      %c0_11 = arith.constant 0 : index
      %13 = vector.load %arg10[%c0_10, %c0_11] : memref<8x128xf32, #tpu.memory_space<vmem>>, vector<8x128xf32>
      %c0_12 = arith.constant 0 : index
      %c0_13 = arith.constant 0 : index
      %14 = vector.load %arg4[%c0_12, %c0_13] : memref<1x128xf32, #tpu.memory_space<vmem>>, vector<1x128xf32>
      %15 = vector.broadcast %14 : vector<1x128xf32> to vector<8x128xf32>
      %16 = arith.addf %13, %15 : vector<8x128xf32>
      %cst_14 = arith.constant 0.000000e+00 : f32
      %17 = vector.broadcast %cst_14 : f32 to vector<8x128xf32>
      %18 = arith.maximumf %16, %17 : vector<8x128xf32>
      %19 = arith.truncf %18 : vector<8x128xf32> to vector<8x128xbf16>
      %c0_15 = arith.constant 0 : index
      %c0_16 = arith.constant 0 : index
      %20 = vector.load %arg5[%c0_15, %c0_16] : memref<128x128xbf16, #tpu.memory_space<vmem>>, vector<128x128xbf16>
      %cst_17 = arith.constant dense<0.000000e+00> : vector<8x128xf32>
      %21 = tpu.matmul %19, %20, %cst_17 {dimension_numbers = #tpu.dot_dimension_numbers<[1], [0], [0], [1], [0, 0, 1, 1], [], []>} : vector<8x128xbf16>, vector<128x128xbf16>, vector<8x128xf32> -> vector<8x128xf32>
      %c0_18 = arith.constant 0 : index
      %c0_19 = arith.constant 0 : index
      %22 = vector.load %arg6[%c0_18, %c0_19] : memref<1x128xf32, #tpu.memory_space<vmem>>, vector<1x128xf32>
      %23 = vector.broadcast %22 : vector<1x128xf32> to vector<8x128xf32>
      %24 = arith.addf %21, %23 : vector<8x128xf32>
      %cst_20 = arith.constant 0.000000e+00 : f32
      %25 = vector.broadcast %cst_20 : f32 to vector<8x128xf32>
      %26 = arith.maximumf %24, %25 : vector<8x128xf32>
      %27 = arith.truncf %26 : vector<8x128xf32> to vector<8x128xbf16>
      %c0_21 = arith.constant 0 : index
      %c0_22 = arith.constant 0 : index
      %28 = vector.load %arg7[%c0_21, %c0_22] : memref<128x128xbf16, #tpu.memory_space<vmem>>, vector<128x128xbf16>
      %cst_23 = arith.constant dense<0.000000e+00> : vector<8x128xf32>
      %29 = tpu.matmul %27, %28, %cst_23 {dimension_numbers = #tpu.dot_dimension_numbers<[1], [0], [0], [1], [0, 0, 1, 1], [], []>} : vector<8x128xbf16>, vector<128x128xbf16>, vector<8x128xf32> -> vector<8x128xf32>
      %c0_24 = arith.constant 0 : index
      %c0_25 = arith.constant 0 : index
      %30 = vector.load %arg8[%c0_24, %c0_25] : memref<1x128xf32, #tpu.memory_space<vmem>>, vector<1x128xf32>
      %31 = vector.broadcast %30 : vector<1x128xf32> to vector<8x128xf32>
      %32 = arith.addf %29, %31 : vector<8x128xf32>
      %c0_26 = arith.constant 0 : index
      %c0_27 = arith.constant 0 : index
      %33 = vector.load %arg9[%c0_26, %c0_27] : memref<8x128xf32, #tpu.memory_space<vmem>>, vector<8x128xf32>
      tpu.vector_store %arg9[%c0_26, %c0_27], %32 {strides = array<i32>} : memref<8x128xf32, #tpu.memory_space<vmem>>, vector<8x128xf32>,
    } else {
    }
    return
  }
  func.func @transform_0(%arg0: i32, %arg1: i32) -> (i32, i32) {
    %c0_i32 = arith.constant 0 : i32
    return %arg0, %arg1 : i32, i32
  }
  func.func @transform_1(%arg0: i32, %arg1: i32) -> (i32, i32) {
    %c0_i32 = arith.constant 0 : i32
    %c0_i32_0 = arith.constant 0 : i32
    return %arg1, %c0_i32 : i32, i32
  }
  func.func @transform_2(%arg0: i32, %arg1: i32) -> (i32, i32) {
    %c0_i32 = arith.constant 0 : i32
    %c0_i32_0 = arith.constant 0 : i32
    %c0_i32_1 = arith.constant 0 : i32
    return %c0_i32, %c0_i32_0 : i32, i32
  }
  func.func @transform_3(%arg0: i32, %arg1: i32) -> (i32, i32) {
    %c0_i32 = arith.constant 0 : i32
    %c0_i32_0 = arith.constant 0 : i32
    %c0_i32_1 = arith.constant 0 : i32
    return %c0_i32, %c0_i32_0 : i32, i32
  }
  func.func @transform_4(%arg0: i32, %arg1: i32) -> (i32, i32) {
    %c0_i32 = arith.constant 0 : i32
    %c0_i32_0 = arith.constant 0 : i32
    %c0_i32_1 = arith.constant 0 : i32
    return %c0_i32, %c0_i32_0 : i32, i32
  }
  func.func @transform_5(%arg0: i32, %arg1: i32) -> (i32, i32) {
    %c0_i32 = arith.constant 0 : i32
    %c0_i32_0 = arith.constant 0 : i32
    %c0_i32_1 = arith.constant 0 : i32
    return %c0_i32, %c0_i32_0 : i32, i32
  }
  func.func @transform_6(%arg0: i32, %arg1: i32) -> (i32, i32) {
    %c0_i32 = arith.constant 0 : i32
    %c0_i32_0 = arith.constant 0 : i32
    %c0_i32_1 = arith.constant 0 : i32
    return %c0_i32, %c0_i32_0 : i32, i32
  }
  func.func @transform_7(%arg0: i32, %arg1: i32) -> (i32, i32) {
    %c0_i32 = arith.constant 0 : i32
    %c0_i32_0 = arith.constant 0 : i32
    return %arg0, %c0_i32 : i32, i32
  }
}

</mosaic_0001>

<bundles_post_ra>
// kernel: tpu_custom_call.1
= control target key start
LH: loop header
LB: loop body
LE: loop exit
PB: predicated region body
PF: predicated region fallthrough
CT: control target
= control target key end

     0   :  { %12 = vsyncpa [#allocation4], 0  ;;  %s881_s0 = inlined_call_operand.hbm [shape: f32[8,256], index: 0, kind: input, shape index: {}]   ;;  %s882_s1 = inlined_call_operand.hbm [shape: bf16[256,128], index: 1, kind: input, shape index: {}]   ;;  %s883_s2 = inlined_call_operand.vmem [shape: f32[1,128], index: 2, kind: input, shape index: {}]   ;;  %s884_s3 = inlined_call_operand.hbm [shape: bf16[128,128], index: 3, kind: input, shape index: {}]   ;;  %s885_s4 = inlined_call_operand.vmem [shape: f32[1,128], index: 4, kind: input, shape index: {}]   ;;  %s886_s5 = inlined_call_operand.hbm [shape: bf16[128,128], index: 5, kind: input, shape index: {}]   ;;  %s887_s6 = inlined_call_operand.vmem [shape: f32[1,128], index: 6, kind: input, shape index: {}]   ;;  %s888_s7 = inlined_call_operand.hbm [shape: f32[8,128], index: 7, kind: output, shape index: {}]  }
   0x1   :  { %13 = vsyncpa [#allocation7], 0 }
   0x2   :  { %14 = vsyncpa [#allocation10], 0 }
   0x3   :  { %15 = vsyncpa [#allocation5], 0  ;;  %s781_s24 = smov [#allocation6]  }
   0x4   :  { %s31_s25 = sshll.u32 %s781_s24, 4  ;;  %s32_s25 = int_to_ptr.vmem [resolvable:$true] %s31_s25 }
   0x5   :  { %s681_s26 = scalar_lea.vmem %s32_s25, 2048  ;;  %p686_p1 = scmp.lt.s32.totalorder %s32_s25, %s32_s25 }
   0x6   :  { %p682_p0 = scmp.ne.s32.totalorder %s32_s25, %s681_s26  ;;  %p687_p2 = scmp.lt.s32.totalorder %s681_s26, %s681_s26 }
   0x8   :  { %p688_p3 = por %p687_p2, %p686_p1 }
   0xa   :  { %p689_p4 = pnand %p688_p3, %p682_p0 }
   0xc   :  { %692 = shalt.err (!%p689_p4)
}
   0xd   :  { %s782_s27 = smov 64   ;;  %s783_s28 = smov 4  }
   0xe   :  { %37 = dma.hbm_to_vmem [thread:$0]  %s882_s1, 2048, %s32_s25, [#allocation7], %s782_s27, %s782_s27, %s783_s28  }
   0xf   :  { %s784_s8 = smov [#allocation3]   ;;  %s785_s10 = smov [#allocation8]  }
  0x10   :  { %s22_s9 = sshll.u32 %s784_s8, 4  ;;  %s45_s11 = sshll.u32 %s785_s10, 4  ;;  %s23_s9 = int_to_ptr.vmem [resolvable:$true] %s22_s9  ;;  %s46_s11 = int_to_ptr.vmem [resolvable:$true] %s45_s11 }
  0x11   :  { %s701_s12 = scalar_lea.vmem %s23_s9, 256  ;;  %p706_p6 = scmp.lt.s32.totalorder %s23_s9, %s23_s9 }
  0x12   :  { %p702_p5 = scmp.ne.s32.totalorder %s23_s9, %s701_s12  ;;  %p707_p7 = scmp.lt.s32.totalorder %s701_s12, %s701_s12 }
  0x14   :  { %p708_p8 = por %p707_p7, %p706_p6 }
  0x16   :  { %p709_p9 = pnand %p708_p8, %p702_p5 }
  0x18   :  { %712 = shalt.err (!%p709_p9)
}
  0x19   :  { %25 = dma.hbm_to_vmem [thread:$0]  %s881_s0, 256, %s23_s9, [#allocation4]  }
  0x1a   :  { %s721_s15 = scalar_lea.vmem %s46_s11, 1024  ;;  %p726_p11 = scmp.lt.s32.totalorder %s46_s11, %s46_s11 }
  0x1b   :  { %p722_p10 = scmp.ne.s32.totalorder %s46_s11, %s721_s15  ;;  %p727_p12 = scmp.lt.s32.totalorder %s721_s15, %s721_s15 }
  0x1d   :  { %p728_p13 = por %p727_p12, %p726_p11 }
  0x1f   :  { %p729_p0 = pnand %p728_p13, %p722_p10 }
  0x21   :  { %732 = shalt.err (!%p729_p0)
}
  0x22   :  { %51 = dma.hbm_to_vmem [thread:$0]  %s884_s3, 1024, %s46_s11, [#allocation7], %s782_s27, %s782_s27, %s783_s28  }
  0x23   :  { %s786_s17 = smov [#allocation9]  }
  0x24   :  { %s59_s18 = sshll.u32 %s786_s17, 4  ;;  %s60_s18 = int_to_ptr.vmem [resolvable:$true] %s59_s18 }
  0x25   :  { %s741_s19 = scalar_lea.vmem %s60_s18, 1024  ;;  %p746_p2 = scmp.lt.s32.totalorder %s60_s18, %s60_s18 }
  0x26   :  { %p742_p1 = scmp.ne.s32.totalorder %s60_s18, %s741_s19  ;;  %p747_p3 = scmp.lt.s32.totalorder %s741_s19, %s741_s19 }
  0x28   :  { %p748_p4 = por %p747_p3, %p746_p2 }
  0x2a   :  { %p749_p5 = pnand %p748_p4, %p742_p1 }
  0x2c   :  { %752 = shalt.err (!%p749_p5)
}
  0x2d   :  { %65 = dma.hbm_to_vmem [thread:$0]  %s886_s5, 1024, %s60_s18, [#allocation10], %s782_s27, %s782_s27, %s783_s28  }
  0x2e   :  { %773 = dma.done.wait [#allocation4], 256  }
  0x2f   :  { %774 = vsyncadd [#allocation4], 4294967040 }
  0x30   :  { %775 = dma.done.wait [#allocation7], 3072  }
  0x31   :  { %776 = vsyncadd [#allocation7], 4294964224 }
  0x32   :  { %777 = dma.done.wait [#allocation10], 1024  }
  0x33   :  { %778 = vsyncadd [#allocation10], 4294966272  ;;  %v787_v0 = vmov 0.0   ;;  %v641_v1 = vld [vmem:[#allocation6 + $0x78] sm:$0xff]   ;;  %v643_v3 = vld [vmem:[#allocation6 + $0x70] sm:$0xff]   ;;  %vm788_vm0 = vmmov 0  }
  0x34   :  { %592 = vmatprep.subr.bf16.mxu1 %v787_v0  ;;  %v642_v2 = vld [vmem:[#allocation6 + $0x38] sm:$0xff]   ;;  %552 = vmatprep.subr.bf16.mxu0 %v641_v1  ;;  %v644_v4 = vld [vmem:[#allocation6 + $0x30] sm:$0xff]   ;;  %v645_v5 = vld [vmem:[#allocation6 + $0x68] sm:$0xff]   ;;  %s789_s24 = smov [#allocation11]  }
  0x35   :  { %553 = vmatpush3.bf16.msra.mxu0 %v642_v2  ;;  %v646_v6 = vld [vmem:[#allocation6 + $0x28] sm:$0xff]   ;;  %v647_v7 = vld [vmem:[#allocation6 + $0x60] sm:$0xff]   ;;  %v649_v9 = vld [vmem:[#allocation6 + $0x58] sm:$0xff]   ;;  %608 = vmatprep.mubr.msk.bf16.mxu1 %vm788_vm0, %v787_v0  ;;  %s506_s25 = sshll.u32 %s789_s24, 4  ;;  %s507_s25 = int_to_ptr.vmem [resolvable:$true] %s506_s25 }
  0x36   :  { %554 = vmatprep.subr.bf16.mxu0 %v643_v3  ;;  %v648_v8 = vld [vmem:[#allocation6 + $0x20] sm:$0xff]   ;;  %v650_v10 = vld [vmem:[#allocation6 + $0x18] sm:$0xff]   ;;  %v651_v11 = vld [vmem:[#allocation6 + $0x50] sm:$0xff]   ;;  %p758_p7 = scmp.lt.s32.totalorder %s507_s25, %s507_s25 }
  0x37   :  { %v87_v12 = vld [vmem:[#allocation3 + $0x8] sm:$0xff]  ;;  %v652_v15 = vld [vmem:[#allocation6 + $0x10] sm:$0xff]   ;;  %v653_v16 = vld [vmem:[#allocation6 + $0x48] sm:$0xff]  }
  0x38   :  { %v89_v13 = vpack.c.bf16 %v87_v12, %v87_v12  ;;  %v657_v14 = vld [vmem:[#allocation8 + $0x38] sm:$0xff]   ;;  %v658_v17 = vld [vmem:[#allocation8 + $0x30] sm:$0xff]   ;;  %v654_v18 = vld [vmem:[#allocation6 + $0x8] sm:$0xff]  }
  0x39   :  { %555 = vmatpush3.bf16.msra.mxu0 %v644_v4  ;;  %593 = vmatpush3.bf16.msra.mxu1 %v657_v14  ;;  %v655_v19 = vld [vmem:[#allocation6 + $0x40] sm:$0xff]   ;;  %v659_v20 = vld [vmem:[#allocation8 + $0x28] sm:$0xff]   ;;  %v86_v22 = vld [vmem:[#allocation3] sm:$0xff] }
  0x3a   :  { %556 = vmatprep.subr.bf16.mxu0 %v645_v5  ;;  %251 = vmatprep.mubr.bf16.mxu0 %v89_v13  ;;  %v656_v21 = vld [vmem:[#allocation6] sm:$0xff]   ;;  %v88_v24 = vpack.c.bf16 %v86_v22, %v86_v22  ;;  %v661_v25 = vld [vmem:[#allocation8 + $0x18] sm:$0xff]   ;;  %v662_v26 = vld [vmem:[#allocation8 + $0x10] sm:$0xff]  }
  0x3b   :  { %594 = vmatprep.subr.bf16.mxu1 %v787_v0  ;;  %v660_v23 = vld [vmem:[#allocation8 + $0x20] sm:$0xff]   ;;  %v663_v27 = vld [vmem:[#allocation8 + $0x8] sm:$0xff]   ;;  %v665_v29 = vld [vmem:[#allocation9 + $0x38] sm:$0xff]  }
  0x3c   :  { %v664_v28 = vld [vmem:[#allocation8] sm:$0xff]   ;;  %v666_v30 = vld [vmem:[#allocation9 + $0x30] sm:$0xff]   ;;  %v667_v31 = vld [vmem:[#allocation9 + $0x28] sm:$0xff]  }
  0x3d   :  { %557 = vmatpush3.bf16.msra.mxu0 %v646_v6  ;;  %595 = vmatpush3.bf16.msra.mxu1 %v658_v17  ;;  %v668_v32 = vld [vmem:[#allocation9 + $0x20] sm:$0xff]   ;;  %v669_v33 = vld [vmem:[#allocation9 + $0x18] sm:$0xff]   ;;  %v670_v34 = vld [vmem:[#allocation9 + $0x10] sm:$0xff]  }
  0x3e   :  { %558 = vmatprep.subr.bf16.mxu0 %v647_v7  ;;  %596 = vmatprep.subr.bf16.mxu1 %v787_v0  ;;  %v533_v37 = vld [vmem:[%s883_s2] ss:$0 sm:$0xff]  ;;  %v671_v44 = vld [vmem:[#allocation9 + $0x8] sm:$0xff]   ;;  %v672_v45 = vld [vmem:[#allocation9] sm:$0xff]  }
  0x3f   :  { %v534_v46 = vld [vmem:[%s885_s4] ss:$0 sm:$0xff]  ;;  %s753_s4 = scalar_lea.vmem %s507_s25, 128 }
  0x40   :  { %v543_v54 = vld [vmem:[%s887_s6] ss:$0 sm:$0xff]  ;;  %p754_p6 = scmp.ne.s32.totalorder %s507_s25, %s753_s4  ;;  %p759_p8 = scmp.lt.s32.totalorder %s753_s4, %s753_s4 }
  0x41   :  { %559 = vmatpush3.bf16.msra.mxu0 %v648_v8  ;;  %597 = vmatpush3.bf16.msra.mxu1 %v659_v20 }
  0x42   :  { %560 = vmatprep.subr.bf16.mxu0 %v649_v9  ;;  %598 = vmatprep.subr.bf16.mxu1 %v787_v0  ;;  %p760_p9 = por %p759_p8, %p758_p7 }
  0x44   :  { %p761_p10 = pnand %p760_p9, %p754_p6 }
  0x45   :  { %561 = vmatpush3.bf16.msra.mxu0 %v650_v10  ;;  %599 = vmatpush3.bf16.msra.mxu1 %v660_v23 }
  0x46   :  { %562 = vmatprep.subr.bf16.mxu0 %v651_v11  ;;  %600 = vmatprep.subr.bf16.mxu1 %v787_v0 }
  0x49   :  { %563 = vmatpush3.bf16.msra.mxu0 %v652_v15  ;;  %601 = vmatpush3.bf16.msra.mxu1 %v661_v25 }
  0x4a   :  { %564 = vmatprep.subr.bf16.mxu0 %v653_v16  ;;  %602 = vmatprep.subr.bf16.mxu1 %v787_v0 }
  0x4d   :  { %565 = vmatpush3.bf16.msra.mxu0 %v654_v18  ;;  %603 = vmatpush3.bf16.msra.mxu1 %v662_v26 }
  0x4e   :  { %566 = vmatprep.subr.bf16.mxu0 %v655_v19  ;;  %604 = vmatprep.subr.bf16.mxu1 %v787_v0 }
  0x51   :  { %567 = vmatpush3.bf16.msra.mxu0 %v656_v21  ;;  %605 = vmatpush3.bf16.msra.mxu1 %v663_v27 }
  0x52   :  { %612 = vmatprep.subr.bf16.mxu0 %v787_v0  ;;  %606 = vmatprep.subr.bf16.mxu1 %v787_v0 }
  0x54   :  { %252 = vmatmul.mubr.bf16.vlgmr.msra.gmra.mxu0 %v88_v24 }
  0x55   :  { %607 = vmatpush3.bf16.msra.mxu1 %v664_v28  ;;  %628 = vmatprep.mubr.msk.bf16.mxu0 %vm788_vm0, %v787_v0 }
  0x56   :  { %613 = vmatpush3.bf16.msra.mxu0 %v665_v29 }
  0x57   :  { %614 = vmatprep.subr.bf16.mxu0 %v787_v0 }
  0x5a   :  { %615 = vmatpush3.bf16.msra.mxu0 %v666_v30 }
  0x5b   :  { %616 = vmatprep.subr.bf16.mxu0 %v787_v0 }
  0x5e   :  { %617 = vmatpush3.bf16.msra.mxu0 %v667_v31 }
  0x5f   :  { %618 = vmatprep.subr.bf16.mxu0 %v787_v0 }
  0x62   :  { %619 = vmatpush3.bf16.msra.mxu0 %v668_v32 }
  0x63   :  { %620 = vmatprep.subr.bf16.mxu0 %v787_v0 }
  0x66   :  { %621 = vmatpush3.bf16.msra.mxu0 %v669_v33 }
  0x67   :  { %622 = vmatprep.subr.bf16.mxu0 %v787_v0 }
  0x6a   :  { %623 = vmatpush3.bf16.msra.mxu0 %v670_v34 }
  0x6b   :  { %624 = vmatprep.subr.bf16.mxu0 %v787_v0 }
  0x6e   :  { %625 = vmatpush3.bf16.msra.mxu0 %v671_v44 }
  0x6f   :  { %626 = vmatprep.subr.bf16.mxu0 %v787_v0 }
  0x72   :  { %627 = vmatpush3.bf16.msra.mxu0 %v672_v45 }
 0x114   :  { %v568_v35 = vpop.f32.mrf.mxu0 }
 0x116   :  { %v569_v36 = vpop.f32.mrf.mxu0 }
 0x117   :  { %v570_v38 = vadd.f32 %v569_v36, %v568_v35 }
 0x118   :  { %v571_v39 = vpop.f32.mrf.mxu0 }
 0x119   :  { %v272_v40 = vadd.f32 %v570_v38, %v533_v37 }
 0x11a   :  { %v572_v41 = vpop.f32.mrf.mxu0 }
 0x11b   :  { %v273_v42 = vmax.f32 %v272_v40, 0.0 }
 0x11d   :  { %v274_v43 = vpack.c.bf16 %v273_v42, %v273_v42 }
 0x11f   :  { %609 = vmatmul.mubr.bf16.vlgmr.msra.gmra.mxu1 %v274_v43 }
 0x1df   :  { %v380_v47 = vpop.f32.mrf.mxu1 }
 0x1e0   :  { %v381_v48 = vadd.f32 %v534_v46, %v380_v47 }
 0x1e1   :  { %v610_v49 = vpop.f32.mrf.mxu1 }
 0x1e2   :  { %v386_v50 = vmax.f32 %v381_v48, 0.0 }
 0x1e3   :  { %v383_v51 = vpop.f32.mrf.mxu1 }
 0x1e4   :  { %v387_v52 = vpack.c.bf16 %v386_v50, %v386_v50 }
 0x1e5   :  { %v611_v53 = vpop.f32.mrf.mxu1 }
 0x1e6   :  { %629 = vmatmul.mubr.bf16.vlgmr.msra.gmra.mxu0 %v387_v52 }
 0x2a6   :  { %v493_v55 = vpop.f32.mrf.mxu0 }
 0x2a7   :  { %v494_v56 = vadd.f32 %v543_v54, %v493_v55 }
 0x2a8   :  { %v630_v57 = vpop.f32.mrf.mxu0 }
 0x2a9   :  { %499 = vst [vmem:[#allocation11] sm:$0xff] %v494_v56 }
 0x2aa   :  { %v496_v58 = vpop.f32.mrf.mxu0 }
 0x2ab   :  { %764 = shalt.err (!%p761_p10)
}
 0x2ac   :  { %509 = dma.vmem_to_hbm [thread:$0]  %s507_s25, 128, %s888_s7, [#allocation5]   ;;  %v631_v59 = vpop.f32.mrf.mxu0 }
 0x2ad   :  { %779 = dma.done.wait [#allocation5], 128  }
 0x2ae   :  { %780 = vsyncadd [#allocation5], 4294967168 }
 0x2af   :  { %513 = vsyncpa [#allocation4], 1 }
 0x2b0   :  { %514 = vsyncpa [#allocation7], 1 }
 0x2b1   :  { %515 = vsyncpa [#allocation10], 1 }
 0x2b2   :  { %516 = vsyncpa [#allocation5], 1 }

// kernel: tpu_custom_call.1
= control target key start
LH: loop header
LB: loop body
LE: loop exit
PB: predicated region body
PF: predicated region fallthrough
CT: control target
= control target key end

     0   :  { %12 = vsyncpa [#allocation4], 0  ;;  %s881_s0 = inlined_call_operand.hbm [shape: f32[8,256], index: 0, kind: input, shape index: {}]   ;;  %s882_s1 = inlined_call_operand.hbm [shape: bf16[256,128], index: 1, kind: input, shape index: {}]   ;;  %s883_s2 = inlined_call_operand.vmem [shape: f32[1,128], index: 2, kind: input, shape index: {}]   ;;  %s884_s3 = inlined_call_operand.hbm [shape: bf16[128,128], index: 3, kind: input, shape index: {}]   ;;  %s885_s4 = inlined_call_operand.vmem [shape: f32[1,128], index: 4, kind: input, shape index: {}]   ;;  %s886_s5 = inlined_call_operand.hbm [shape: bf16[128,128], index: 5, kind: input, shape index: {}]   ;;  %s887_s6 = inlined_call_operand.vmem [shape: f32[1,128], index: 6, kind: input, shape index: {}]   ;;  %s888_s7 = inlined_call_operand.hbm [shape: f32[8,128], index: 7, kind: output, shape index: {}]  }
   0x1   :  { %13 = vsyncpa [#allocation7], 0 }
   0x2   :  { %14 = vsyncpa [#allocation10], 0 }
   0x3   :  { %15 = vsyncpa [#allocation5], 0  ;;  %s781_s24 = smov [#allocation6]  }
   0x4   :  { %s31_s25 = sshll.u32 %s781_s24, 4  ;;  %s32_s25 = int_to_ptr.vmem [resolvable:$true] %s31_s25 }
   0x5   :  { %s681_s26 = scalar_lea.vmem %s32_s25, 2048  ;;  %p686_p1 = scmp.lt.s32.totalorder %s32_s25, %s32_s25 }
   0x6   :  { %p682_p0 = scmp.ne.s32.totalorder %s32_s25, %s681_s26  ;;  %p687_p2 = scmp.lt.s32.totalorder %s681_s26, %s681_s26 }
   0x8   :  { %p688_p3 = por %p687_p2, %p686_p1 }
   0xa   :  { %p689_p4 = pnand %p688_p3, %p682_p0 }
   0xc   :  { %692 = shalt.err (!%p689_p4)
}
   0xd   :  { %s782_s27 = smov 64   ;;  %s783_s28 = smov 4  }
   0xe   :  { %37 = dma.hbm_to_vmem [thread:$0]  %s882_s1, 2048, %s32_s25, [#allocation7], %s782_s27, %s782_s27, %s783_s28  }
   0xf   :  { %s784_s8 = smov [#allocation3]   ;;  %s785_s10 = smov [#allocation8]  }
  0x10   :  { %s22_s9 = sshll.u32 %s784_s8, 4  ;;  %s45_s11 = sshll.u32 %s785_s10, 4  ;;  %s23_s9 = int_to_ptr.vmem [resolvable:$true] %s22_s9  ;;  %s46_s11 = int_to_ptr.vmem [resolvable:$true] %s45_s11 }
  0x11   :  { %s701_s12 = scalar_lea.vmem %s23_s9, 256  ;;  %p706_p6 = scmp.lt.s32.totalorder %s23_s9, %s23_s9 }
  0x12   :  { %p702_p5 = scmp.ne.s32.totalorder %s23_s9, %s701_s12  ;;  %p707_p7 = scmp.lt.s32.totalorder %s701_s12, %s701_s12 }
  0x14   :  { %p708_p8 = por %p707_p7, %p706_p6 }
  0x16   :  { %p709_p9 = pnand %p708_p8, %p702_p5 }
  0x18   :  { %712 = shalt.err (!%p709_p9)
}
  0x19   :  { %25 = dma.hbm_to_vmem [thread:$0]  %s881_s0, 256, %s23_s9, [#allocation4]  }
  0x1a   :  { %s721_s15 = scalar_lea.vmem %s46_s11, 1024  ;;  %p726_p11 = scmp.lt.s32.totalorder %s46_s11, %s46_s11 }
  0x1b   :  { %p722_p10 = scmp.ne.s32.totalorder %s46_s11, %s721_s15  ;;  %p727_p12 = scmp.lt.s32.totalorder %s721_s15, %s721_s15 }
  0x1d   :  { %p728_p13 = por %p727_p12, %p726_p11 }
  0x1f   :  { %p729_p0 = pnand %p728_p13, %p722_p10 }
  0x21   :  { %732 = shalt.err (!%p729_p0)
}
  0x22   :  { %51 = dma.hbm_to_vmem [thread:$0]  %s884_s3, 1024, %s46_s11, [#allocation7], %s782_s27, %s782_s27, %s783_s28  }
  0x23   :  { %s786_s17 = smov [#allocation9]  }
  0x24   :  { %s59_s18 = sshll.u32 %s786_s17, 4  ;;  %s60_s18 = int_to_ptr.vmem [resolvable:$true] %s59_s18 }
  0x25   :  { %s741_s19 = scalar_lea.vmem %s60_s18, 1024  ;;  %p746_p2 = scmp.lt.s32.totalorder %s60_s18, %s60_s18 }
  0x26   :  { %p742_p1 = scmp.ne.s32.totalorder %s60_s18, %s741_s19  ;;  %p747_p3 = scmp.lt.s32.totalorder %s741_s19, %s741_s19 }
  0x28   :  { %p748_p4 = por %p747_p3, %p746_p2 }
  0x2a   :  { %p749_p5 = pnand %p748_p4, %p742_p1 }
  0x2c   :  { %752 = shalt.err (!%p749_p5)
}
  0x2d   :  { %65 = dma.hbm_to_vmem [thread:$0]  %s886_s5, 1024, %s60_s18, [#allocation10], %s782_s27, %s782_s27, %s783_s28  }
  0x2e   :  { %773 = dma.done.wait [#allocation4], 256  }
  0x2f   :  { %774 = vsyncadd [#allocation4], 4294967040 }
  0x30   :  { %775 = dma.done.wait [#allocation7], 3072  }
  0x31   :  { %776 = vsyncadd [#allocation7], 4294964224 }
  0x32   :  { %777 = dma.done.wait [#allocation10], 1024  }
  0x33   :  { %778 = vsyncadd [#allocation10], 4294966272  ;;  %v787_v0 = vmov 0.0   ;;  %v641_v1 = vld [vmem:[#allocation6 + $0x78] sm:$0xff]   ;;  %v643_v3 = vld [vmem:[#allocation6 + $0x70] sm:$0xff]   ;;  %vm788_vm0 = vmmov 0  }
  0x34   :  { %592 = vmatprep.subr.bf16.mxu1 %v787_v0  ;;  %v642_v2 = vld [vmem:[#allocation6 + $0x38] sm:$0xff]   ;;  %552 = vmatprep.subr.bf16.mxu0 %v641_v1  ;;  %v644_v4 = vld [vmem:[#allocation6 + $0x30] sm:$0xff]   ;;  %v645_v5 = vld [vmem:[#allocation6 + $0x68] sm:$0xff]   ;;  %s789_s24 = smov [#allocation11]  }
  0x35   :  { %553 = vmatpush3.bf16.msra.mxu0 %v642_v2  ;;  %v646_v6 = vld [vmem:[#allocation6 + $0x28] sm:$0xff]   ;;  %v647_v7 = vld [vmem:[#allocation6 + $0x60] sm:$0xff]   ;;  %v649_v9 = vld [vmem:[#allocation6 + $0x58] sm:$0xff]   ;;  %608 = vmatprep.mubr.msk.bf16.mxu1 %vm788_vm0, %v787_v0  ;;  %s506_s25 = sshll.u32 %s789_s24, 4  ;;  %s507_s25 = int_to_ptr.vmem [resolvable:$true] %s506_s25 }
  0x36   :  { %554 = vmatprep.subr.bf16.mxu0 %v643_v3  ;;  %v648_v8 = vld [vmem:[#allocation6 + $0x20] sm:$0xff]   ;;  %v650_v10 = vld [vmem:[#allocation6 + $0x18] sm:$0xff]   ;;  %v651_v11 = vld [vmem:[#allocation6 + $0x50] sm:$0xff]   ;;  %p758_p7 = scmp.lt.s32.totalorder %s507_s25, %s507_s25 }
  0x37   :  { %v87_v12 = vld [vmem:[#allocation3 + $0x8] sm:$0xff]  ;;  %v652_v15 = vld [vmem:[#allocation6 + $0x10] sm:$0xff]   ;;  %v653_v16 = vld [vmem:[#allocation6 + $0x48] sm:$0xff]  }
  0x38   :  { %v89_v13 = vpack.c.bf16 %v87_v12, %v87_v12  ;;  %v657_v14 = vld [vmem:[#allocation8 + $0x38] sm:$0xff]   ;;  %v658_v17 = vld [vmem:[#allocation8 + $0x30] sm:$0xff]   ;;  %v654_v18 = vld [vmem:[#allocation6 + $0x8] sm:$0xff]  }
  0x39   :  { %555 = vmatpush3.bf16.msra.mxu0 %v644_v4  ;;  %593 = vmatpush3.bf16.msra.mxu1 %v657_v14  ;;  %v655_v19 = vld [vmem:[#allocation6 + $0x40] sm:$0xff]   ;;  %v659_v20 = vld [vmem:[#allocation8 + $0x28] sm:$0xff]   ;;  %v86_v22 = vld [vmem:[#allocation3] sm:$0xff] }
  0x3a   :  { %556 = vmatprep.subr.bf16.mxu0 %v645_v5  ;;  %251 = vmatprep.mubr.bf16.mxu0 %v89_v13  ;;  %v656_v21 = vld [vmem:[#allocation6] sm:$0xff]   ;;  %v88_v24 = vpack.c.bf16 %v86_v22, %v86_v22  ;;  %v661_v25 = vld [vmem:[#allocation8 + $0x18] sm:$0xff]   ;;  %v662_v26 = vld [vmem:[#allocation8 + $0x10] sm:$0xff]  }
  0x3b   :  { %594 = vmatprep.subr.bf16.mxu1 %v787_v0  ;;  %v660_v23 = vld [vmem:[#allocation8 + $0x20] sm:$0xff]   ;;  %v663_v27 = vld [vmem:[#allocation8 + $0x8] sm:$0xff]   ;;  %v665_v29 = vld [vmem:[#allocation9 + $0x38] sm:$0xff]  }
  0x3c   :  { %v664_v28 = vld [vmem:[#allocation8] sm:$0xff]   ;;  %v666_v30 = vld [vmem:[#allocation9 + $0x30] sm:$0xff]   ;;  %v667_v31 = vld [vmem:[#allocation9 + $0x28] sm:$0xff]  }
  0x3d   :  { %557 = vmatpush3.bf16.msra.mxu0 %v646_v6  ;;  %595 = vmatpush3.bf16.msra.mxu1 %v658_v17  ;;  %v668_v32 = vld [vmem:[#allocation9 + $0x20] sm:$0xff]   ;;  %v669_v33 = vld [vmem:[#allocation9 + $0x18] sm:$0xff]   ;;  %v670_v34 = vld [vmem:[#allocation9 + $0x10] sm:$0xff]  }
  0x3e   :  { %558 = vmatprep.subr.bf16.mxu0 %v647_v7  ;;  %596 = vmatprep.subr.bf16.mxu1 %v787_v0  ;;  %v533_v37 = vld [vmem:[%s883_s2] ss:$0 sm:$0xff]  ;;  %v671_v44 = vld [vmem:[#allocation9 + $0x8] sm:$0xff]   ;;  %v672_v45 = vld [vmem:[#allocation9] sm:$0xff]  }
  0x3f   :  { %v534_v46 = vld [vmem:[%s885_s4] ss:$0 sm:$0xff]  ;;  %s753_s4 = scalar_lea.vmem %s507_s25, 128 }
  0x40   :  { %v543_v54 = vld [vmem:[%s887_s6] ss:$0 sm:$0xff]  ;;  %p754_p6 = scmp.ne.s32.totalorder %s507_s25, %s753_s4  ;;  %p759_p8 = scmp.lt.s32.totalorder %s753_s4, %s753_s4 }
  0x41   :  { %559 = vmatpush3.bf16.msra.mxu0 %v648_v8  ;;  %597 = vmatpush3.bf16.msra.mxu1 %v659_v20 }
  0x42   :  { %560 = vmatprep.subr.bf16.mxu0 %v649_v9  ;;  %598 = vmatprep.subr.bf16.mxu1 %v787_v0  ;;  %p760_p9 = por %p759_p8, %p758_p7 }
  0x44   :  { %p761_p10 = pnand %p760_p9, %p754_p6 }
  0x45   :  { %561 = vmatpush3.bf16.msra.mxu0 %v650_v10  ;;  %599 = vmatpush3.bf16.msra.mxu1 %v660_v23 }
  0x46   :  { %562 = vmatprep.subr.bf16.mxu0 %v651_v11  ;;  %600 = vmatprep.subr.bf16.mxu1 %v787_v0 }
  0x49   :  { %563 = vmatpush3.bf16.msra.mxu0 %v652_v15  ;;  %601 = vmatpush3.bf16.msra.mxu1 %v661_v25 }
  0x4a   :  { %564 = vmatprep.subr.bf16.mxu0 %v653_v16  ;;  %602 = vmatprep.subr.bf16.mxu1 %v787_v0 }
  0x4d   :  { %565 = vmatpush3.bf16.msra.mxu0 %v654_v18  ;;  %603 = vmatpush3.bf16.msra.mxu1 %v662_v26 }
  0x4e   :  { %566 = vmatprep.subr.bf16.mxu0 %v655_v19  ;;  %604 = vmatprep.subr.bf16.mxu1 %v787_v0 }
  0x51   :  { %567 = vmatpush3.bf16.msra.mxu0 %v656_v21  ;;  %605 = vmatpush3.bf16.msra.mxu1 %v663_v27 }
  0x52   :  { %612 = vmatprep.subr.bf16.mxu0 %v787_v0  ;;  %606 = vmatprep.subr.bf16.mxu1 %v787_v0 }
  0x54   :  { %252 = vmatmul.mubr.bf16.vlgmr.msra.gmra.mxu0 %v88_v24 }
  0x55   :  { %607 = vmatpush3.bf16.msra.mxu1 %v664_v28  ;;  %628 = vmatprep.mubr.msk.bf16.mxu0 %vm788_vm0, %v787_v0 }
  0x56   :  { %613 = vmatpush3.bf16.msra.mxu0 %v665_v29 }
  0x57   :  { %614 = vmatprep.subr.bf16.mxu0 %v787_v0 }
  0x5a   :  { %615 = vmatpush3.bf16.msra.mxu0 %v666_v30 }
  0x5b   :  { %616 = vmatprep.subr.bf16.mxu0 %v787_v0 }
  0x5e   :  { %617 = vmatpush3.bf16.msra.mxu0 %v667_v31 }
  0x5f   :  { %618 = vmatprep.subr.bf16.mxu0 %v787_v0 }
  0x62   :  { %619 = vmatpush3.bf16.msra.mxu0 %v668_v32 }
  0x63   :  { %620 = vmatprep.subr.bf16.mxu0 %v787_v0 }
  0x66   :  { %621 = vmatpush3.bf16.msra.mxu0 %v669_v33 }
  0x67   :  { %622 = vmatprep.subr.bf16.mxu0 %v787_v0 }
  0x6a   :  { %623 = vmatpush3.bf16.msra.mxu0 %v670_v34 }
  0x6b   :  { %624 = vmatprep.subr.bf16.mxu0 %v787_v0 }
  0x6e   :  { %625 = vmatpush3.bf16.msra.mxu0 %v671_v44 }
  0x6f   :  { %626 = vmatprep.subr.bf16.mxu0 %v787_v0 }
  0x72   :  { %627 = vmatpush3.bf16.msra.mxu0 %v672_v45 }
 0x114   :  { %v568_v35 = vpop.f32.mrf.mxu0 }
 0x116   :  { %v569_v36 = vpop.f32.mrf.mxu0 }
 0x117   :  { %v570_v38 = vadd.f32 %v569_v36, %v568_v35 }
 0x118   :  { %v571_v39 = vpop.f32.mrf.mxu0 }
 0x119   :  { %v272_v40 = vadd.f32 %v570_v38, %v533_v37 }
 0x11a   :  { %v572_v41 = vpop.f32.mrf.mxu0 }
 0x11b   :  { %v273_v42 = vmax.f32 %v272_v40, 0.0 }
 0x11d   :  { %v274_v43 = vpack.c.bf16 %v273_v42, %v273_v42 }
 0x11f   :  { %609 = vmatmul.mubr.bf16.vlgmr.msra.gmra.mxu1 %v274_v43 }
 0x1df   :  { %v380_v47 = vpop.f32.mrf.mxu1 }
 0x1e0   :  { %v381_v48 = vadd.f32 %v534_v46, %v380_v47 }
 0x1e1   :  { %v610_v49 = vpop.f32.mrf.mxu1 }
 0x1e2   :  { %v386_v50 = vmax.f32 %v381_v48, 0.0 }
 0x1e3   :  { %v383_v51 = vpop.f32.mrf.mxu1 }
 0x1e4   :  { %v387_v52 = vpack.c.bf16 %v386_v50, %v386_v50 }
 0x1e5   :  { %v611_v53 = vpop.f32.mrf.mxu1 }
 0x1e6   :  { %629 = vmatmul.mubr.bf16.vlgmr.msra.gmra.mxu0 %v387_v52 }
 0x2a6   :  { %v493_v55 = vpop.f32.mrf.mxu0 }
 0x2a7   :  { %v494_v56 = vadd.f32 %v543_v54, %v493_v55 }
 0x2a8   :  { %v630_v57 = vpop.f32.mrf.mxu0 }
 0x2a9   :  { %499 = vst [vmem:[#allocation11] sm:$0xff] %v494_v56 }
 0x2aa   :  { %v496_v58 = vpop.f32.mrf.mxu0 }
 0x2ab   :  { %764 = shalt.err (!%p761_p10)
}
 0x2ac   :  { %509 = dma.vmem_to_hbm [thread:$0]  %s507_s25, 128, %s888_s7, [#allocation5]   ;;  %v631_v59 = vpop.f32.mrf.mxu0 }
 0x2ad   :  { %779 = dma.done.wait [#allocation5], 128  }
 0x2ae   :  { %780 = vsyncadd [#allocation5], 4294967168 }
 0x2af   :  { %513 = vsyncpa [#allocation4], 1 }
 0x2b0   :  { %514 = vsyncpa [#allocation7], 1 }
 0x2b1   :  { %515 = vsyncpa [#allocation10], 1 }
 0x2b2   :  { %516 = vsyncpa [#allocation5], 1 }

</bundles_post_ra>
